<compile_context>
chip_gen: v7x
topology: tpu7x:2x2x1
jax: 0.10.0
libtpu: 0.0.40
codegen_flags: <defaults>
</compile_context>

<pallas_src>
import math

import jax
import jax.numpy as jnp
import numpy as np
from jax.experimental import pallas as pl
from jax.experimental.pallas import tpu as pltpu
from jax.scipy.special import gammaln

# ---- constants from the PyTorch module ----
EULERGAMMA = 0.5772            # matches the (truncated) torch constant
REAL_MIN = 1e-10
PRIOR_SCALE = 1.0
PRIOR_SHAPE = 0.01
LGAMMA_PRIOR_SHAPE = math.lgamma(PRIOR_SHAPE)      # scalar, host-side
PRIOR_TERM = PRIOR_SHAPE * math.log(PRIOR_SCALE)    # == 0.0
# cfg.TRAIN.COEFF.KL_theta1_LOSS comes from an external config file.
# TODO(synk): cfg is not part of the module; fixed deterministically to 1.0.
KL_COEFF = 1.0

# Lanczos approximation of lgamma (g = 7, 9 coefficients), rewritten as a
# rational function  x(z) = c0 + sum_i c_i/(z-1+i) == P(z)/Q(z)  with
# Q(z) = z (z+1) ... (z+7) and P a degree-8 polynomial built host-side.
_LANCZOS_G = 7.0
_LANCZOS_COEF = (
    0.99999999999980993,
    676.5203681218851,
    -1259.1392167224028,
    771.32342877765313,
    -176.61502916214059,
    12.507343278686905,
    -0.13857109526572012,
    9.9843695780195716e-6,
    1.5056327351493116e-7,
)
_HALF_LOG_2PI = 0.5 * math.log(2.0 * math.pi)


def _build_lanczos_rational_numerator():
    q = np.array([1.0])
    for j in range(8):
        q = np.convolve(q, np.array([1.0, float(j)]))          # * (z + j)
    p = _LANCZOS_COEF[0] * q                                    # degree 8
    for i in range(1, 9):
        qi = np.array([1.0])
        for j in range(8):
            if j != i - 1:
                qi = np.convolve(qi, np.array([1.0, float(j)]))  # degree 7
        p[-qi.shape[0]:] += _LANCZOS_COEF[i] * qi
    return tuple(float(c) for c in p)                            # highest-degree first


_LANCZOS_P = _build_lanczos_rational_numerator()


def _log_max(x):
    return jnp.log(jnp.maximum(x, REAL_MIN))


def _lgamma_rational(z):
    """In-kernel lgamma via rational Lanczos; valid for z >= ~0.5 (here z > 1)."""
    p = jnp.full_like(z, _LANCZOS_P[0])
    for c in _LANCZOS_P[1:]:
        p = p * z + c                       # VPU FMAs (Horner)
    q = z
    for j in range(1, 8):
        q = q * (z + float(j))              # VPU multiplies
    x = p * pl.reciprocal(q)                # single EUP reciprocal (vs 8 divides)
    t = z + _LANCZOS_G - 0.5
    return _HALF_LOG_2PI + (z - 0.5) * jnp.log(t) - t + jnp.log(x)


def _myloss_kernel(lgam_t_ref, shape1_ref, scale1_ref, theta1_ref, phi1t_ref,
                   t_txt_ref, out_ref, acc_ref):
    v = pl.program_id(0)
    nv = pl.num_programs(0)

    @pl.when(v == 0)
    def _init():
        acc_ref[0] = 0.0

    # ---- Poisson likelihood partial over this V tile:  theta1 @ phi1.T ----
    lam = jnp.dot(theta1_ref[...], phi1t_ref[...],
                  preferred_element_type=jnp.float32)            # [N, tv]
    # NOTE: unclamped log mirrors torch.log(torch.matmul(...)) in the original.
    acc_ref[0] += jnp.sum(t_txt_ref[...] * jnp.log(lam) - lam)

    @pl.when(v == nv - 1)
    def _finalize():
        shape1 = shape1_ref[...]
        scale1 = scale1_ref[...]

        inv_shape = pl.reciprocal(shape1)                        # reused 3x
        log_scale = _log_max(scale1)

        part1 = (EULERGAMMA * (1.0 - inv_shape)
                 + _log_max(scale1 * inv_shape) + 1.0 + PRIOR_TERM)
        part2 = (-LGAMMA_PRIOR_SHAPE
                 + (PRIOR_SHAPE - 1.0) * (log_scale - EULERGAMMA * inv_shape))
        part3 = (-PRIOR_SCALE * scale1
                 * jnp.exp(_lgamma_rational(1.0 + inv_shape)))

        sum_p1 = jnp.sum(part1)
        sum_p2 = jnp.sum(part2)
        sum_p3 = jnp.sum(part3)
        theta1_kl = sum_p1 + sum_p2 + sum_p3                     # no extra reduce

        likelihood = acc_ref[0] - lgam_t_ref[0]                  # hoisted lgamma sum
        loss = KL_COEFF * theta1_kl + likelihood

        out_ref[0] = -loss
        out_ref[1] = theta1_kl
        out_ref[2] = likelihood
        out_ref[3] = sum_p1
        out_ref[4] = sum_p2
        out_ref[5] = sum_p3
        out_ref[6] = jnp.min(shape1)
        out_ref[7] = jnp.min(scale1)


def my_loss(shape1, scale1, phi1, theta1, t_txt, *, matmul_dtype=jnp.float32):
    """Pallas equivalent of myLoss.forward((shape1, scale1, phi1, theta1, t_txt))."""
    shape1 = shape1.astype(jnp.float32)
    scale1 = scale1.astype(jnp.float32)
    phi1 = phi1.astype(jnp.float32)
    theta1 = theta1.astype(jnp.float32)
    t_txt = t_txt.astype(jnp.float32)

    n, k = theta1.shape
    v_dim = phi1.shape[0]

    # Data-only term hoisted out of the kernel (native XLA lgamma).
    lgam_t_sum = jnp.sum(gammaln(t_txt + 1.0)).reshape(1)

    # Weight-like pre-transpose so the kernel does a plain [N,K] @ [K,V].
    # (bf16 operands recommended on v6e/v7x at real sizes via matmul_dtype;
    #  default stays f32 for exact fidelity to the torch module.)
    phi1_t = jnp.transpose(phi1).astype(matmul_dtype)            # [K, V]
    theta1_mm = theta1.astype(matmul_dtype)

    # Lane-dense repack of the [N, K] KL tensors (sum / min are layout-invariant).
    if (n * k) % 128 == 0:
        kl_shape = ((n * k) // 128, 128)
    else:
        kl_shape = (n, k)
    shape1_p = shape1.reshape(kl_shape)
    scale1_p = scale1.reshape(kl_shape)

    # Tile over V so t_txt / phi1 DMA pipelines behind compute.
    tv = v_dim
    for cand in (512, 256, 128):
        if v_dim % cand == 0:
            tv = cand
            break
    grid = (v_dim // tv,)

    # Explicit VMEM budget (re-derived per tile size; v7x has only 64 MiB).
    itemsize = 4
    tile_bytes = (n * tv + k * tv) * itemsize                    # t_txt + phi1 tiles
    resident = (n * k + 2 * shape1_p.size + n * tv) * itemsize   # theta1, KL, lam
    vmem_limit = int(min(60 * 2 ** 20,
                         max(32 * 2 ** 20, 4 * (2 * tile_bytes + resident))))

    smem = pltpu.MemorySpace.SMEM
    in_specs = [
        pl.BlockSpec(memory_space=smem),                 # hoisted lgamma sum (scalar)
        pl.BlockSpec(kl_shape, lambda v: (0, 0)),        # shape1 (lane-packed)
        pl.BlockSpec(kl_shape, lambda v: (0, 0)),        # scale1 (lane-packed)
        pl.BlockSpec((n, k), lambda v: (0, 0)),          # theta1
        pl.BlockSpec((k, tv), lambda v: (0, v)),         # phi1.T  [K, V] tile
        pl.BlockSpec((n, tv), lambda v: (0, v)),         # t_txt   [N, V] tile
    ]

    out = pl.pallas_call(
        _myloss_kernel,
        out_shape=jax.ShapeDtypeStruct((8,), jnp.float32),
        grid=grid,
        in_specs=in_specs,
        out_specs=pl.BlockSpec(memory_space=smem),       # single merged scalar buffer
        scratch_shapes=[pltpu.SMEM((1,), jnp.float32)],  # likelihood accumulator
        compiler_params=pltpu.CompilerParams(
            dimension_semantics=("arbitrary",),          # V axis carries accumulator
            vmem_limit_bytes=vmem_limit),
    )(lgam_t_sum, shape1_p, scale1_p, theta1_mm, phi1_t, t_txt)

    return tuple(out[i] for i in range(8))


def my_loss_ref(shape1, scale1, phi1, theta1, t_txt):
    """Pure-JAX reference matching the PyTorch forward (for verification)."""
    part1 = (EULERGAMMA * (1.0 - 1.0 / shape1)
             + _log_max(scale1 / shape1) + 1.0
             + PRIOR_SHAPE * jnp.log(PRIOR_SCALE))
    part2 = -gammaln(PRIOR_SHAPE) + (PRIOR_SHAPE - 1.0) * (
        _log_max(scale1) - EULERGAMMA / shape1)
    part3 = -PRIOR_SCALE * scale1 * jnp.exp(gammaln(1.0 + 1.0 / shape1))
    kl = part1 + part2 + part3
    theta1_kl = jnp.sum(kl)
    lam = theta1 @ phi1.T
    lik = jnp.sum(t_txt * jnp.log(lam) - lam - gammaln(t_txt + 1.0))
    loss = KL_COEFF * theta1_kl + lik
    return (-loss, theta1_kl, lik, jnp.sum(part1), jnp.sum(part2),
            jnp.sum(part3), jnp.min(shape1), jnp.min(scale1))


if __name__ == "__main__":
    # Small synthetic shapes: N docs, K topics, V vocab.
    N, K, V = 8, 32, 128
    key = jax.random.PRNGKey(0)
    k1, k2, k3, k4, k5 = jax.random.split(key, 5)

    shape1 = jax.random.uniform(k1, (N, K), jnp.float32, 0.5, 2.0)   # Weibull shape
    scale1 = jax.random.uniform(k2, (N, K), jnp.float32, 0.5, 2.0)   # Weibull scale
    phi1 = jax.random.uniform(k3, (V, K), jnp.float32, 0.1, 1.0)     # topic-word matrix
    theta1 = jax.random.uniform(k4, (N, K), jnp.float32, 0.1, 1.0)   # doc-topic matrix
    t_txt = jnp.floor(jax.random.uniform(k5, (N, V), jnp.float32, 0.0, 5.0))  # counts

    out = my_loss(shape1, scale1, phi1, theta1, t_txt)
    out = jax.block_until_ready(out)

    ref = my_loss_ref(shape1, scale1, phi1, theta1, t_txt)
    for got, want in zip(out, ref):
        np.testing.assert_allclose(np.asarray(got), np.asarray(want),
                                   rtol=3e-3, atol=1.0)

    print("KERNEL_OK")
</pallas_src>

<mosaic_0001>
module attributes {stable_mosaic.version = 11 : i64} {
  func.func @_myloss_kernel(%arg0: i32, %arg1: memref<1xf32, #tpu.memory_space<smem>>, %arg2: memref<2x128xf32, #tpu.memory_space<vmem>>, %arg3: memref<2x128xf32, #tpu.memory_space<vmem>>, %arg4: memref<8x32xf32, #tpu.memory_space<vmem>>, %arg5: memref<32x128xf32, #tpu.memory_space<vmem>>, %arg6: memref<8x128xf32, #tpu.memory_space<vmem>>, %arg7: memref<8xf32, #tpu.memory_space<smem>>, %arg8: memref<1xf32, #tpu.memory_space<smem>>) attributes {dimension_semantics = [#tpu.dimension_semantics<arbitrary>], iteration_bounds = array<i64: 1>, scalar_prefetch = 0 : i64, scratch_operands = 1 : i64, tpu.core_type = #tpu.core_type<tc>, window_params = [{transform_indices = @transform_0, window_bounds = array<i64: 1>}, {pipeline_mode = #tpu.pipeline_mode<synchronous>, transform_indices = @transform_1, window_bounds = array<i64: 2, 128>}, {pipeline_mode = #tpu.pipeline_mode<synchronous>, transform_indices = @transform_2, window_bounds = array<i64: 2, 128>}, {pipeline_mode = #tpu.pipeline_mode<synchronous>, transform_indices = @transform_3, window_bounds = array<i64: 8, 32>}, {transform_indices = @transform_4, window_bounds = array<i64: 32, 128>}, {transform_indices = @transform_5, window_bounds = array<i64: 8, 128>}, {transform_indices = @transform_6, window_bounds = array<i64: 8>}]} {
    %c0_i32 = arith.constant 0 : i32
    %0 = arith.cmpi eq, %arg0, %c0_i32 : i32
    %1 = arith.extui %0 : i1 to i32
    %c0_i32_0 = arith.constant 0 : i32
    %2 = arith.cmpi ne, %1, %c0_i32_0 : i32
    scf.if %2 {
      %cst_11 = arith.constant 0.000000e+00 : f32
      %c0_12 = arith.constant 0 : index
      %20 = memref.load %arg8[%c0_12] : memref<1xf32, #tpu.memory_space<smem>>
      memref.store %cst_11, %arg8[%c0_12] : memref<1xf32, #tpu.memory_space<smem>>
    } else {
    }
    %c0 = arith.constant 0 : index
    %c0_1 = arith.constant 0 : index
    %3 = vector.load %arg4[%c0, %c0_1] : memref<8x32xf32, #tpu.memory_space<vmem>>, vector<8x32xf32>
    %c0_2 = arith.constant 0 : index
    %c0_3 = arith.constant 0 : index
    %4 = vector.load %arg5[%c0_2, %c0_3] : memref<32x128xf32, #tpu.memory_space<vmem>>, vector<32x128xf32>
    %cst = arith.constant dense<0.000000e+00> : vector<8x128xf32>
    %5 = tpu.matmul %3, %4, %cst {dimension_numbers = #tpu.dot_dimension_numbers<[1], [0], [0], [1], [0, 0, 1, 1], [], []>} : vector<8x32xf32>, vector<32x128xf32>, vector<8x128xf32> -> vector<8x128xf32>
    %c0_4 = arith.constant 0 : index
    %6 = memref.load %arg8[%c0_4] : memref<1xf32, #tpu.memory_space<smem>>
    %c0_5 = arith.constant 0 : index
    %c0_6 = arith.constant 0 : index
    %7 = vector.load %arg6[%c0_5, %c0_6] : memref<8x128xf32, #tpu.memory_space<vmem>>, vector<8x128xf32>
    %8 = math.log %5 : vector<8x128xf32>
    %9 = arith.mulf %7, %8 : vector<8x128xf32>
    %10 = arith.subf %9, %5 : vector<8x128xf32>
    %11 = vector.shape_cast %10 : vector<8x128xf32> to vector<1x8x128xf32>
    %cst_7 = arith.constant dense<0.000000e+00> : vector<1xf32>
    %12 = vector.multi_reduction <add>, %11, %cst_7 [1, 2] : vector<1x8x128xf32> to vector<1xf32>
    %13 = vector.shape_cast %12 : vector<1xf32> to vector<1x1x1xf32>
    %14 = vector.extract %13[0, 0, 0] : f32 from vector<1x1x1xf32>
    %15 = arith.addf %6, %14 : f32
    %c0_8 = arith.constant 0 : index
    %16 = memref.load %arg8[%c0_8] : memref<1xf32, #tpu.memory_space<smem>>
    memref.store %15, %arg8[%c0_8] : memref<1xf32, #tpu.memory_space<smem>>
    %c0_i32_9 = arith.constant 0 : i32
    %17 = arith.cmpi eq, %arg0, %c0_i32_9 : i32
    %18 = arith.extui %17 : i1 to i32
    %c0_i32_10 = arith.constant 0 : i32
    %19 = arith.cmpi ne, %18, %c0_i32_10 : i32
    scf.if %19 {
      %c0_11 = arith.constant 0 : index
      %c0_12 = arith.constant 0 : index
      %20 = vector.load %arg2[%c0_11, %c0_12] : memref<2x128xf32, #tpu.memory_space<vmem>>, vector<2x128xf32>
      %c0_13 = arith.constant 0 : index
      %c0_14 = arith.constant 0 : index
      %21 = vector.load %arg3[%c0_13, %c0_14] : memref<2x128xf32, #tpu.memory_space<vmem>>, vector<2x128xf32>
      %22 = tpu.reciprocal %20 : vector<2x128xf32> -> vector<2x128xf32>
      %cst_15 = arith.constant 1.000000e-10 : f32
      %23 = vector.broadcast %cst_15 : f32 to vector<2x128xf32>
      %24 = arith.maximumf %21, %23 : vector<2x128xf32>
      %25 = math.log %24 : vector<2x128xf32>
      %cst_16 = arith.constant 1.000000e+00 : f32
      %26 = vector.broadcast %cst_16 : f32 to vector<2x128xf32>
      %27 = arith.subf %26, %22 : vector<2x128xf32>
      %cst_17 = arith.constant 5.772000e-01 : f32
      %28 = vector.broadcast %cst_17 : f32 to vector<2x128xf32>
      %29 = arith.mulf %28, %27 : vector<2x128xf32>
      %30 = arith.mulf %21, %22 : vector<2x128xf32>
      %cst_18 = arith.constant 1.000000e-10 : f32
      %31 = vector.broadcast %cst_18 : f32 to vector<2x128xf32>
      %32 = arith.maximumf %30, %31 : vector<2x128xf32>
      %33 = math.log %32 : vector<2x128xf32>
      %34 = arith.addf %29, %33 : vector<2x128xf32>
      %cst_19 = arith.constant 1.000000e+00 : f32
      %35 = vector.broadcast %cst_19 : f32 to vector<2x128xf32>
      %36 = arith.addf %34, %35 : vector<2x128xf32>
      %cst_20 = arith.constant 0.000000e+00 : f32
      %37 = vector.broadcast %cst_20 : f32 to vector<2x128xf32>
      %38 = arith.addf %36, %37 : vector<2x128xf32>
      %cst_21 = arith.constant 5.772000e-01 : f32
      %39 = vector.broadcast %cst_21 : f32 to vector<2x128xf32>
      %40 = arith.mulf %39, %22 : vector<2x128xf32>
      %41 = arith.subf %25, %40 : vector<2x128xf32>
      %cst_22 = arith.constant -9.900000e-01 : f32
      %42 = vector.broadcast %cst_22 : f32 to vector<2x128xf32>
      %43 = arith.mulf %42, %41 : vector<2x128xf32>
      %cst_23 = arith.constant -4.59947968 : f32
      %44 = vector.broadcast %cst_23 : f32 to vector<2x128xf32>
      %45 = arith.addf %44, %43 : vector<2x128xf32>
      %cst_24 = arith.constant -1.000000e+00 : f32
      %46 = vector.broadcast %cst_24 : f32 to vector<2x128xf32>
      %47 = arith.mulf %46, %21 : vector<2x128xf32>
      %cst_25 = arith.constant 1.000000e+00 : f32
      %48 = vector.broadcast %cst_25 : f32 to vector<2x128xf32>
      %49 = arith.addf %48, %22 : vector<2x128xf32>
      %cst_26 = arith.constant 1.000000e+00 : f32
      %50 = vector.broadcast %cst_26 : f32 to vector<2x128xf32>
      %51 = arith.mulf %50, %49 : vector<2x128xf32>
      %cst_27 = arith.constant 52.4583321 : f32
      %52 = vector.broadcast %cst_27 : f32 to vector<2x128xf32>
      %53 = arith.addf %51, %52 : vector<2x128xf32>
      %54 = arith.mulf %53, %49 : vector<2x128xf32>
      %cst_28 = arith.constant 1203.83423 : f32
      %55 = vector.broadcast %cst_28 : f32 to vector<2x128xf32>
      %56 = arith.addf %54, %55 : vector<2x128xf32>
      %57 = arith.mulf %56, %49 : vector<2x128xf32>
      %cst_29 = arith.constant 15784.8809 : f32
      %58 = vector.broadcast %cst_29 : f32 to vector<2x128xf32>
      %59 = arith.addf %57, %58 : vector<2x128xf32>
      %60 = arith.mulf %59, %49 : vector<2x128xf32>
      %cst_30 = arith.constant 129347.258 : f32
      %61 = vector.broadcast %cst_30 : f32 to vector<2x128xf32>
      %62 = arith.addf %60, %61 : vector<2x128xf32>
      %63 = arith.mulf %62, %49 : vector<2x128xf32>
      %cst_31 = arith.constant 678289.688 : f32
      %64 = vector.broadcast %cst_31 : f32 to vector<2x128xf32>
      %65 = arith.addf %63, %64 : vector<2x128xf32>
      %66 = arith.mulf %65, %49 : vector<2x128xf32>
      %cst_32 = arith.constant 2222880.5 : f32
      %67 = vector.broadcast %cst_32 : f32 to vector<2x128xf32>
      %68 = arith.addf %66, %67 : vector<2x128xf32>
      %69 = arith.mulf %68, %49 : vector<2x128xf32>
      %cst_33 = arith.constant 0x4A7E0D50 : f32
      %70 = vector.broadcast %cst_33 : f32 to vector<2x128xf32>
      %71 = arith.addf %69, %70 : vector<2x128xf32>
      %72 = arith.mulf %71, %49 : vector<2x128xf32>
      %cst_34 = arith.constant 3409662.75 : f32
      %73 = vector.broadcast %cst_34 : f32 to vector<2x128xf32>
      %74 = arith.addf %72, %73 : vector<2x128xf32>
      %cst_35 = arith.constant 1.000000e+00 : f32
      %75 = vector.broadcast %cst_35 : f32 to vector<2x128xf32>
      %76 = arith.addf %49, %75 : vector<2x128xf32>
      %77 = arith.mulf %49, %76 : vector<2x128xf32>
      %cst_36 = arith.constant 2.000000e+00 : f32
      %78 = vector.broadcast %cst_36 : f32 to vector<2x128xf32>
      %79 = arith.addf %49, %78 : vector<2x128xf32>
      %80 = arith.mulf %77, %79 : vector<2x128xf32>
      %cst_37 = arith.constant 3.000000e+00 : f32
      %81 = vector.broadcast %cst_37 : f32 to vector<2x128xf32>
      %82 = arith.addf %49, %81 : vector<2x128xf32>
      %83 = arith.mulf %80, %82 : vector<2x128xf32>
      %cst_38 = arith.constant 4.000000e+00 : f32
      %84 = vector.broadcast %cst_38 : f32 to vector<2x128xf32>
      %85 = arith.addf %49, %84 : vector<2x128xf32>
      %86 = arith.mulf %83, %85 : vector<2x128xf32>
      %cst_39 = arith.constant 5.000000e+00 : f32
      %87 = vector.broadcast %cst_39 : f32 to vector<2x128xf32>
      %88 = arith.addf %49, %87 : vector<2x128xf32>
      %89 = arith.mulf %86, %88 : vector<2x128xf32>
      %cst_40 = arith.constant 6.000000e+00 : f32
      %90 = vector.broadcast %cst_40 : f32 to vector<2x128xf32>
      %91 = arith.addf %49, %90 : vector<2x128xf32>
      %92 = arith.mulf %89, %91 : vector<2x128xf32>
      %cst_41 = arith.constant 7.000000e+00 : f32
      %93 = vector.broadcast %cst_41 : f32 to vector<2x128xf32>
      %94 = arith.addf %49, %93 : vector<2x128xf32>
      %95 = arith.mulf %92, %94 : vector<2x128xf32>
      %96 = tpu.reciprocal %95 : vector<2x128xf32> -> vector<2x128xf32>
      %97 = arith.mulf %74, %96 : vector<2x128xf32>
      %cst_42 = arith.constant 7.000000e+00 : f32
      %98 = vector.broadcast %cst_42 : f32 to vector<2x128xf32>
      %99 = arith.addf %49, %98 : vector<2x128xf32>
      %cst_43 = arith.constant 5.000000e-01 : f32
      %100 = vector.broadcast %cst_43 : f32 to vector<2x128xf32>
      %101 = arith.subf %99, %100 : vector<2x128xf32>
      %cst_44 = arith.constant 5.000000e-01 : f32
      %102 = vector.broadcast %cst_44 : f32 to vector<2x128xf32>
      %103 = arith.subf %49, %102 : vector<2x128xf32>
      %104 = math.log %101 : vector<2x128xf32>
      %105 = arith.mulf %103, %104 : vector<2x128xf32>
      %cst_45 = arith.constant 0.918938517 : f32
      %106 = vector.broadcast %cst_45 : f32 to vector<2x128xf32>
      %107 = arith.addf %106, %105 : vector<2x128xf32>
      %108 = arith.subf %107, %101 : vector<2x128xf32>
      %109 = math.log %97 : vector<2x128xf32>
      %110 = arith.addf %108, %109 : vector<2x128xf32>
      %111 = math.exp %110 : vector<2x128xf32>
      %112 = arith.mulf %47, %111 : vector<2x128xf32>
      %113 = vector.shape_cast %38 : vector<2x128xf32> to vector<1x2x128xf32>
      %cst_46 = arith.constant dense<0.000000e+00> : vector<1xf32>
      %114 = vector.multi_reduction <add>, %113, %cst_46 [1, 2] : vector<1x2x128xf32> to vector<1xf32>
      %115 = vector.shape_cast %114 : vector<1xf32> to vector<1x1x1xf32>
      %116 = vector.extract %115[0, 0, 0] : f32 from vector<1x1x1xf32>
      %117 = vector.shape_cast %45 : vector<2x128xf32> to vector<1x2x128xf32>
      %cst_47 = arith.constant dense<0.000000e+00> : vector<1xf32>
      %118 = vector.multi_reduction <add>, %117, %cst_47 [1, 2] : vector<1x2x128xf32> to vector<1xf32>
      %119 = vector.shape_cast %118 : vector<1xf32> to vector<1x1x1xf32>
      %120 = vector.extract %119[0, 0, 0] : f32 from vector<1x1x1xf32>
      %121 = vector.shape_cast %112 : vector<2x128xf32> to vector<1x2x128xf32>
      %cst_48 = arith.constant dense<0.000000e+00> : vector<1xf32>
      %122 = vector.multi_reduction <add>, %121, %cst_48 [1, 2] : vector<1x2x128xf32> to vector<1xf32>
      %123 = vector.shape_cast %122 : vector<1xf32> to vector<1x1x1xf32>
      %124 = vector.extract %123[0, 0, 0] : f32 from vector<1x1x1xf32>
      %125 = arith.addf %116, %120 : f32
      %126 = arith.addf %125, %124 : f32
      %c0_49 = arith.constant 0 : index
      %127 = memref.load %arg8[%c0_49] : memref<1xf32, #tpu.memory_space<smem>>
      %c0_50 = arith.constant 0 : index
      %128 = memref.load %arg1[%c0_50] : memref<1xf32, #tpu.memory_space<smem>>
      %129 = arith.subf %127, %128 : f32
      %cst_51 = arith.constant 1.000000e+00 : f32
      %130 = arith.mulf %cst_51, %126 : f32
      %131 = arith.addf %130, %129 : f32
      %cst_52 = arith.constant 0.000000e+00 : f32
      %132 = arith.subf %cst_52, %131 : f32
      %c0_53 = arith.constant 0 : index
      %133 = memref.load %arg7[%c0_53] : memref<8xf32, #tpu.memory_space<smem>>
      memref.store %132, %arg7[%c0_53] : memref<8xf32, #tpu.memory_space<smem>>
      %c1 = arith.constant 1 : index
      %134 = memref.load %arg7[%c1] : memref<8xf32, #tpu.memory_space<smem>>
      memref.store %126, %arg7[%c1] : memref<8xf32, #tpu.memory_space<smem>>
      %c2 = arith.constant 2 : index
      %135 = memref.load %arg7[%c2] : memref<8xf32, #tpu.memory_space<smem>>
      memref.store %129, %arg7[%c2] : memref<8xf32, #tpu.memory_space<smem>>
      %c3 = arith.constant 3 : index
      %136 = memref.load %arg7[%c3] : memref<8xf32, #tpu.memory_space<smem>>
      memref.store %116, %arg7[%c3] : memref<8xf32, #tpu.memory_space<smem>>
      %c4 = arith.constant 4 : index
      %137 = memref.load %arg7[%c4] : memref<8xf32, #tpu.memory_space<smem>>
      memref.store %120, %arg7[%c4] : memref<8xf32, #tpu.memory_space<smem>>
      %c5 = arith.constant 5 : index
      %138 = memref.load %arg7[%c5] : memref<8xf32, #tpu.memory_space<smem>>
      memref.store %124, %arg7[%c5] : memref<8xf32, #tpu.memory_space<smem>>
      %139 = vector.shape_cast %20 : vector<2x128xf32> to vector<1x2x128xf32>
      %cst_54 = arith.constant dense<0x7F800000> : vector<1xf32>
      %140 = vector.multi_reduction <minimumf>, %139, %cst_54 [1, 2] : vector<1x2x128xf32> to vector<1xf32>
      %141 = vector.shape_cast %140 : vector<1xf32> to vector<1x1x1xf32>
      %142 = vector.extract %141[0, 0, 0] : f32 from vector<1x1x1xf32>
      %c6 = arith.constant 6 : index
      %143 = memref.load %arg7[%c6] : memref<8xf32, #tpu.memory_space<smem>>
      memref.store %142, %arg7[%c6] : memref<8xf32, #tpu.memory_space<smem>>
      %144 = vector.shape_cast %21 : vector<2x128xf32> to vector<1x2x128xf32>
      %cst_55 = arith.constant dense<0x7F800000> : vector<1xf32>
      %145 = vector.multi_reduction <minimumf>, %144, %cst_55 [1, 2] : vector<1x2x128xf32> to vector<1xf32>
      %146 = vector.shape_cast %145 : vector<1xf32> to vector<1x1x1xf32>
      %147 = vector.extract %146[0, 0, 0] : f32 from vector<1x1x1xf32>
      %c7 = arith.constant 7 : index
      %148 = memref.load %arg7[%c7] : memref<8xf32, #tpu.memory_space<smem>>
      memref.store %147, %arg7[%c7] : memref<8xf32, #tpu.memory_space<smem>>
    } else {
    }
    return
  }
  func.func @transform_0(%arg0: i32) -> i32 {
    %c0_i32 = arith.constant 0 : i32
    %c0_i32_0 = arith.constant 0 : i32
    return %c0_i32 : i32
  }
  func.func @transform_1(%arg0: i32) -> (i32, i32) {
    %c0_i32 = arith.constant 0 : i32
    %c0_i32_0 = arith.constant 0 : i32
    %c0_i32_1 = arith.constant 0 : i32
    return %c0_i32, %c0_i32_0 : i32, i32
  }
  func.func @transform_2(%arg0: i32) -> (i32, i32) {
    %c0_i32 = arith.constant 0 : i32
    %c0_i32_0 = arith.constant 0 : i32
    %c0_i32_1 = arith.constant 0 : i32
    return %c0_i32, %c0_i32_0 : i32, i32
  }
  func.func @transform_3(%arg0: i32) -> (i32, i32) {
    %c0_i32 = arith.constant 0 : i32
    %c0_i32_0 = arith.constant 0 : i32
    %c0_i32_1 = arith.constant 0 : i32
    return %c0_i32, %c0_i32_0 : i32, i32
  }
  func.func @transform_4(%arg0: i32) -> (i32, i32) {
    %c0_i32 = arith.constant 0 : i32
    %c0_i32_0 = arith.constant 0 : i32
    return %c0_i32, %arg0 : i32, i32
  }
  func.func @transform_5(%arg0: i32) -> (i32, i32) {
    %c0_i32 = arith.constant 0 : i32
    %c0_i32_0 = arith.constant 0 : i32
    return %c0_i32, %arg0 : i32, i32
  }
  func.func @transform_6(%arg0: i32) -> i32 {
    %c0_i32 = arith.constant 0 : i32
    %c0_i32_0 = arith.constant 0 : i32
    return %c0_i32 : i32
  }
}

</mosaic_0001>

<bundles_post_ra>
// kernel: tpu_custom_call.1
= control target key start
LH: loop header
LB: loop body
LE: loop exit
PB: predicated region body
PF: predicated region fallthrough
CT: control target
= control target key end

     0   :  { %12 = vsyncpa [#allocation5], 0  ;;  %s545_s0 = inlined_call_operand.<no memory space> [shape: f32[1], index: 0, kind: input, shape index: {}]   ;;  %s546_s1 = inlined_call_operand.vmem [shape: f32[2,128], index: 1, kind: input, shape index: {}]   ;;  %s547_s2 = inlined_call_operand.hbm [shape: f32[2,128], index: 2, kind: input, shape index: {}]   ;;  %s548_s3 = inlined_call_operand.vmem [shape: f32[8,32], index: 3, kind: input, shape index: {}]   ;;  %s549_s4 = inlined_call_operand.hbm [shape: f32[32,128], index: 4, kind: input, shape index: {}]   ;;  %s550_s5 = inlined_call_operand.vmem [shape: f32[8,128], index: 5, kind: input, shape index: {}]   ;;  %s551_s6 = inlined_call_operand.hbm [shape: f32[8], index: 6, kind: output, shape index: {}]  }
   0x1   :  { %13 = vsyncpa [#allocation8], 0 }
   0x2   :  { %14 = vsyncpa [#allocation6], 0  ;;  %s432_s21 = smov [#allocation4]   ;;  %s433_s23 = smov [#allocation7]  }
   0x3   :  { %s25_s22 = sshll.u32 %s432_s21, 4  ;;  %s36_s24 = sshll.u32 %s433_s23, 4  ;;  %s26_s22 = int_to_ptr.vmem [resolvable:$true] %s25_s22  ;;  %s475_s24 = int_to_ptr.vmem [resolvable:$true] %s36_s24 }
   0x4   :  { %s372_s27 = scalar_lea.hbm %s547_s2, 32 }
   0x5   :  { %p373_p0 = scmp.ne.s32.totalorder %s547_s2, %s372_s27  ;;  %p376_p1 = scmp.lt.u32.totalorder %s372_s27, %s547_s2 }
   0x7   :  { %p378_p2 = pnand %p376_p1, %p373_p0 }
   0x9   :  { %381 = shalt.err (!%p378_p2)
}
   0xa   :  { %s382_s8 = scalar_lea.vmem %s26_s22, 32  ;;  %p387_p4 = scmp.lt.s32.totalorder %s26_s22, %s26_s22 }
   0xb   :  { %p383_p3 = scmp.ne.s32.totalorder %s26_s22, %s382_s8  ;;  %p388_p5 = scmp.lt.s32.totalorder %s382_s8, %s382_s8 }
   0xd   :  { %p389_p6 = por %p388_p5, %p387_p4 }
   0xf   :  { %p390_p7 = pnand %p389_p6, %p383_p3 }
  0x11   :  { %393 = shalt.err (!%p390_p7)
}
  0x12   :  { %28 = dma.hbm_to_vmem [thread:$0]  %s547_s2, 32, %s26_s22, [#allocation5]  }
  0x13   :  { %s394_s13 = scalar_lea.hbm %s549_s4, 512 }
  0x14   :  { %p395_p8 = scmp.ne.s32.totalorder %s549_s4, %s394_s13  ;;  %p398_p9 = scmp.lt.u32.totalorder %s394_s13, %s549_s4 }
  0x16   :  { %p400_p10 = pnand %p398_p9, %p395_p8 }
  0x18   :  { %403 = shalt.err (!%p400_p10)
}
  0x19   :  { %s404_s18 = scalar_lea.vmem %s475_s24, 512  ;;  %p409_p12 = scmp.lt.s32.totalorder %s475_s24, %s475_s24 }
  0x1a   :  { %p405_p11 = scmp.ne.s32.totalorder %s475_s24, %s404_s18  ;;  %p410_p13 = scmp.lt.s32.totalorder %s404_s18, %s404_s18 }
  0x1c   :  { %p411_p0 = por %p410_p13, %p409_p12 }
  0x1e   :  { %p412_p1 = pnand %p411_p0, %p405_p11 }
  0x20   :  { %415 = shalt.err (!%p412_p1)
}
  0x21   :  { %s434_s2 = smov 128   ;;  %s435_s19 = smov 8  }
  0x22   :  { %42 = dma.hbm_to_vmem [thread:$0]  %s549_s4, 512, %s475_s24, [#allocation8], %s434_s2, %s434_s2, %s435_s19  }
  0x23   :  { %426 = dma.done.wait [#allocation5], 32  }
  0x24   :  { %427 = vsyncadd [#allocation5], 4294967264 }
  0x25   :  { %428 = dma.done.wait [#allocation8], 512  }
  0x26   :  { %429 = vsyncadd [#allocation8], 4294966784  ;;  %v436_v0 = vmov 0.0|0.0   ;;  %vm437_vm0 = vmmov 0   ;;  %v438_v1 = vmov 0.0   ;;  %v58_v2 = vld [vmem:[#allocation7] sm:$0xff] }
  0x27   :  { %330 = vmatprep.subr.bf16.mxu0 %v436_v0  ;;  %327 = vmatprep.mubr.msk.f32.mxu0 %vm437_vm0, %v438_v1  ;;  %v59_v3 = vld [vmem:[#allocation7 + $0x8] sm:$0xff]  ;;  %v60_v4 = vld [vmem:[#allocation7 + $0x10] sm:$0xff]  ;;  %v61_v6 = vld [vmem:[#allocation7 + $0x18] sm:$0xff]  ;;  %vm62_vm1 = vcmask 261120   ;;  %vm222_vm2 = vcmask 1041408  }
  0x28   :  { %v331_v5 = vpack.c.bf16 %v59_v3, %v58_v2  ;;  %v334_v7 = vpack.c.bf16 %v61_v6, %v60_v4  ;;  %v57_v8 = vld [vmem:[%s548_s3] sm:$0xff] }
  0x29   :  { %v512_v9 = vld [vmem:[%s546_s1] sm:$0x3] }
  0x2a   :  { %332 = vmatpush3.bf16.msra.mxu0 %v331_v5  ;;  %356 = vrcp.f32 %v512_v9  ;;  %v158_v45 = vld [vmem:[#allocation4] sm:$0x3] }
  0x2b   :  { %333 = vmatprep.subr.bf16.mxu0 %v436_v0  ;;  %v160_v46 = vmax.f32 %v158_v45, 1e-10  ;;  %v176_v0 = vmul.f32 -1.0, %v158_v45 }
  0x2e   :  { %335 = vmatpush3.bf16.msra.mxu0 %v334_v7 }
  0x31   :  { %328 = vmatmul.mubr.msk.f32.vlgmr.msra.gmra.mrb[0].mxu0 %vm62_vm1, %v57_v8 }
  0x34   :  { %v515_v10 = vpop.eup %356 }
  0x35   :  { %v177_v11 = vadd.f32 1.0, %v515_v10  ;;  %v165_v55 = vmul.f32 %v515_v10, %v158_v45  ;;  %v172_v58 = vmul.f32 0.5772, %v515_v10  ;;  %v163_v2 = vsub.f32 1.0, %v515_v10 }
  0x37   :  { %v178_v12 = vadd.f32 52.458332, %v177_v11  ;;  %v193_v14 = vadd.f32 1.0, %v177_v11  ;;  %v195_v17 = vadd.f32 2.0, %v177_v11  ;;  %v197_v20 = vadd.f32 3.0, %v177_v11 }
  0x38   :  { %v199_v23 = vadd.f32 4.0, %v177_v11  ;;  %v201_v26 = vadd.f32 5.0, %v177_v11  ;;  %v203_v29 = vadd.f32 6.0, %v177_v11  ;;  %v205_v32 = vadd.f32 7.0, %v177_v11 }
  0x39   :  { %v179_v13 = vmul.f32 %v178_v12, %v177_v11  ;;  %v194_v16 = vmul.f32 %v193_v14, %v177_v11  ;;  %v313_v47 = vadd.f32 -0.5, %v177_v11  ;;  %v166_v57 = vmax.f32 %v165_v55, 1e-10 }
  0x3a   :  { %v312_v39 = vadd.f32 -0.5, %v205_v32  ;;  %v164_v6 = vmul.f32 0.5772, %v163_v2  ;;  %v284_v14 = vsel %vm222_vm2, %v158_v45, inf }
  0x3b   :  { %v180_v15 = vadd.f32 1203.8342, %v179_v13  ;;  %v196_v19 = vmul.f32 %v195_v17, %v194_v16  ;;  %v137_v17 = vld [vmem:[%s550_s5] sm:$0xff] }
  0x3d   :  { %v181_v18 = vmul.f32 %v180_v15, %v177_v11  ;;  %v198_v22 = vmul.f32 %v197_v20, %v196_v19 }
  0x3f   :  { %v182_v21 = vadd.f32 15784.881, %v181_v18  ;;  %v200_v25 = vmul.f32 %v199_v23, %v198_v22 }
  0x41   :  { %v183_v24 = vmul.f32 %v182_v21, %v177_v11  ;;  %v202_v28 = vmul.f32 %v201_v26, %v200_v25  ;;  %v272_v21 = vsel %vm222_vm2, %v512_v9, inf }
  0x43   :  { %v184_v27 = vadd.f32 129347.26, %v183_v24  ;;  %v204_v31 = vmul.f32 %v203_v29, %v202_v28 }
  0x45   :  { %v185_v30 = vmul.f32 %v184_v27, %v177_v11  ;;  %v206_v34 = vmul.f32 %v205_v32, %v204_v31 }
  0x47   :  { %v186_v33 = vadd.f32 678289.7, %v185_v30  ;;  %358 = vrcp.f32 %v206_v34 }
  0x48   :  { %360 = vlog2.f32 %v312_v39 }
  0x49   :  { %v187_v35 = vmul.f32 %v186_v33, %v177_v11 }
  0x4b   :  { %v188_v36 = vadd.f32 2222880.5, %v187_v35 }
  0x4d   :  { %v189_v37 = vmul.f32 %v188_v36, %v177_v11 }
  0x4f   :  { %v190_v38 = vadd.f32 4162388.0, %v189_v37 }
  0x51   :  { %v191_v40 = vmul.f32 %v190_v38, %v177_v11  ;;  %v359_v42 = vpop.eup %358 }
  0x52   :  { %v361_v44 = vpop.eup %360 }
  0x53   :  { %v192_v41 = vadd.f32 3409662.8, %v191_v40  ;;  %v212_v48 = vmul.f32 0.6931472, %v361_v44 }
  0x55   :  { %v208_v43 = vmul.f32 %v359_v42, %v192_v41  ;;  %v213_v49 = vmul.f32 %v313_v47, %v212_v48 }
  0x57   :  { %362 = vlog2.f32 %v208_v43  ;;  %v214_v50 = vadd.f32 0.9189385, %v213_v49 }
  0x58   :  { %364 = vlog2.f32 %v160_v46 }
  0x59   :  { %v215_v52 = vsub.f32 %v214_v50, %v312_v39 }
  0x61   :  { %v363_v51 = vpop.eup %362 }
  0x62   :  { %v217_v53 = vmul.f32 0.6931472, %v363_v51  ;;  %v365_v59 = vpop.eup %364 }
  0x63   :  { %v162_v60 = vmul.f32 0.6931472, %v365_v59 }
  0x64   :  { %v218_v54 = vadd.f32 %v217_v53, %v215_v52 }
  0x65   :  { %v173_v61 = vsub.f32 %v162_v60, %v172_v58 }
  0x66   :  { %v219_v56 = vmul.f32 1.442695, %v218_v54 }
  0x67   :  { %v174_v62 = vmul.f32 -0.99, %v173_v61 }
  0x68   :  { %366 = vpow2.f32 %v219_v56 }
  0x69   :  { %368 = vlog2.f32 %v166_v57  ;;  %v175_v63 = vadd.f32 -4.5994797, %v174_v62 }
  0x6b   :  { %v233_v1 = vsel %vm222_vm2, %v175_v63, 0.0 }
  0x6c   :  { %234 = vadd.xlane.f32.xlu1 %v233_v1 }
  0x72   :  { %v367_v3 = vpop.eup %366 }
  0x73   :  { %v369_v4 = vpop.eup %368  ;;  %v221_v5 = vmul.f32 %v367_v3, %v176_v0 }
  0x74   :  { %v168_v7 = vmul.f32 0.6931472, %v369_v4 }
  0x75   :  { %v243_v8 = vsel %vm222_vm2, %v221_v5, 0.0 }
  0x76   :  { %244 = vadd.xlane.f32.xlu1 %v243_v8  ;;  %v169_v11 = vadd.f32 %v168_v7, %v164_v6 }
  0x78   :  { %v170_v12 = vadd.f32 1.0, %v169_v11 }
  0x7a   :  { %v223_v13 = vsel %vm222_vm2, %v170_v12, 0.0  ;;  %285 = vmin.xlane.f32.xlu1 %v284_v14 }
  0xf9   :  { %v235_v22 = vpop.xlane.xlu1 %234 }
  0xfa   :  { %v236_v24 = vrot.slane %v235_v22, 4 }
  0xfc   :  { %v237_v27 = vadd.f32 %v236_v24, %v235_v22 }
  0xfe   :  { %v238_v33 = vrot.slane %v237_v27, 2 }
 0x100   :  { %v239_v42 = vadd.f32 %v238_v33, %v237_v27 }
 0x102   :  { %v240_v51 = vrot.slane %v239_v42, 1 }
 0x103   :  { %v245_v23 = vpop.xlane.xlu1 %244 }
 0x104   :  { %v132_v15 = vpop.f32.mrb[0].mxu0  ;;  %v246_v25 = vrot.slane %v245_v23, 4  ;;  %v241_v57 = vadd.f32 %v240_v51, %v239_v42 }
 0x105   :  { %370 = vlog2.f32 %v132_v15  ;;  %v329_v16 = vpop.f32.mrb[1].mxu0 }
 0x106   :  { %v247_v30 = vadd.f32 %v246_v25, %v245_v23 }
 0x107   :  { %v286_v26 = vpop.xlane.xlu1 %285 }
 0x108   :  { %v287_v29 = vrot.slane %v286_v26, 4  ;;  %v248_v36 = vrot.slane %v247_v30, 2 }
 0x10a   :  { %v288_v35 = vmin.f32 %v286_v26, %v287_v29  ;;  %v249_v46 = vadd.f32 %v248_v36, %v247_v30 }
 0x10c   :  { %v289_v40 = vrot.slane %v288_v35, 2  ;;  %v250_v54 = vrot.slane %v249_v46, 1 }
 0x10e   :  { %v290_v50 = vmin.f32 %v288_v35, %v289_v40  ;;  %v251_v59 = vadd.f32 %v250_v54, %v249_v46 }
 0x10f   :  { %v371_v10 = vpop.eup %370 }
 0x110   :  { %v139_v18 = vmul.f32 0.6931472, %v371_v10  ;;  %v291_v58 = vrot.slane %v290_v50, 1 }
 0x112   :  { %v140_v19 = vmul.f32 %v139_v18, %v137_v17  ;;  %v292_v62 = vmin.f32 %v290_v50, %v291_v58 }
 0x114   :  { %v141_v20 = vsub.f32 %v140_v19, %v132_v15 }
 0x116   :  { %142 = vadd.xlane.f32.xlu0 %v141_v20 }
 0x11a   :  { %224 = vadd.xlane.f32.xlu0 %v223_v13 }
 0x11e   :  { %273 = vmin.xlane.f32.xlu0 %v272_v21 }
 0x1a3   :  { %v143_v28 = vpop.xlane.xlu0 %142 }
 0x1a4   :  { %v144_v31 = vrot.slane %v143_v28, 4 }
 0x1a6   :  { %v145_v32 = vadd.f32 %v144_v31, %v143_v28 }
 0x1a7   :  { %v225_v34 = vpop.xlane.xlu0 %224 }
 0x1a8   :  { %v146_v37 = vrot.slane %v145_v32, 2  ;;  %v226_v38 = vrot.slane %v225_v34, 4 }
 0x1aa   :  { %v227_v39 = vadd.f32 %v226_v38, %v225_v34  ;;  %v147_v9 = vadd.f32 %v146_v37, %v145_v32 }
 0x1ab   :  { %v274_v41 = vpop.xlane.xlu0 %273 }
 0x1ac   :  { %v228_v43 = vrot.slane %v227_v39, 2  ;;  %v275_v44 = vrot.slane %v274_v41, 4  ;;  %v148_v45 = vrot.slane %v147_v9, 1 }
 0x1ae   :  { %v276_v47 = vmin.f32 %v274_v41, %v275_v44  ;;  %v149_v48 = vadd.f32 %v148_v45, %v147_v9  ;;  %v229_v49 = vadd.f32 %v228_v43, %v227_v39 }
 0x1b0   :  { %v277_v52 = vrot.slane %v276_v47, 2  ;;  %336 = vpush %v149_v48  ;;  %v230_v53 = vrot.slane %v229_v49, 1 }
 0x1b2   :  { %v278_v55 = vmin.f32 %v276_v47, %v277_v52  ;;  %v231_v56 = vadd.f32 %v230_v53, %v229_v49 }
 0x1b4   :  { %338 = vpush %v231_v56  ;;  %v279_v60 = vrot.slane %v278_v55, 1 }
 0x1b5   :  { %340 = vpush %v241_v57 }
 0x1b6   :  { %342 = vpush %v251_v59  ;;  %v280_v61 = vmin.f32 %v278_v55, %v279_v60 }
 0x1b8   :  { %344 = vpush %v280_v61 }
 0x1b9   :  { %346 = vpush %v292_v62 }
 0x1e1   :  { %s337_s5 = spop %336 }
 0x1e2   :  { %s257_s27 = ssub.f32 %s337_s5, %s545_s0  ;;  %s416_s0 = scalar_lea.hbm %s551_s6, 16 }
 0x1e3   :  { %p417_p2 = scmp.ne.s32.totalorder %s551_s6, %s416_s0  ;;  %p420_p3 = scmp.lt.u32.totalorder %s416_s0, %s551_s6 }
 0x1e4   :  { %265 = sst [smem:[#allocation9 + $0x2]] %s257_s27 }
 0x1e5   :  { %s339_s28 = spop %338  ;;  %p422_p4 = pnand %p420_p3, %p417_p2 }
 0x1e6   :  { %267 = sst [smem:[#allocation9 + $0x3]] %s339_s28  ;;  %s341_s29 = spop %340 }
 0x1e7   :  { %s253_s30 = sadd.f32 %s341_s29, %s339_s28  ;;  %s343_s7 = spop %342 }
 0x1e8   :  { %269 = sst [smem:[#allocation9 + $0x4]] %s341_s29 }
 0x1e9   :  { %s254_s8 = sadd.f32 %s343_s7, %s253_s30  ;;  %s345_s10 = spop %344 }
 0x1ea   :  { %271 = sst [smem:[#allocation9 + $0x5]] %s343_s7  ;;  %s347_s12 = spop %346 }
 0x1eb   :  { %s258_s9 = sadd.f32 %s257_s27, %s254_s8 }
 0x1ec   :  { %263 = sst [smem:[#allocation9 + $0x1]] %s254_s8 }
 0x1ed   :  { %s259_s11 = ssub.f32 0.0, %s258_s9 }
 0x1ee   :  { %283 = sst [smem:[#allocation9 + $0x6]] %s345_s10 }
 0x1ef   :  { %261 = sst [smem:[#allocation9]] %s259_s11 }
 0x1f0   :  { %295 = sst [smem:[#allocation9 + $0x7]] %s347_s12 }
 0x1f1   :  { %425 = shalt.err (!%p422_p4)
}
 0x1f2   :  { %s439_s2 = smov [#allocation9]  }
 0x1f3   :  { %303 = dma.smem_to_hbm %s439_s2, 16, %s551_s6, [#allocation6]  }
 0x1f4   :  { %430 = dma.done.wait [#allocation6], 16  }
 0x1f5   :  { %431 = vsyncadd [#allocation6], 4294967280 }
 0x1f6   :  { %307 = sfence }
 0x1f7   :  { %308 = vsyncpa [#allocation5], 1 }
 0x1f8   :  { %309 = vsyncpa [#allocation8], 1 }
 0x1f9   :  { %310 = vsyncpa [#allocation6], 1 }

</bundles_post_ra>
